<compile_context>
chip_gen: v6e
topology: v6e:2x2x1
jax: 0.10.0
libtpu: 0.0.40
codegen_flags: <defaults>
</compile_context>

<pallas_src>
import functools

import jax
import jax.numpy as jnp
from jax.experimental import pallas as pl
from jax.experimental.pallas import tpu as pltpu


# --------------------------------------------------------------------------- #
# Kernel
# --------------------------------------------------------------------------- #
def mlp_kernel(x_ref,
               w1_ref, b1_ref,
               w2_ref, b2_ref,
               w3_ref, b3_ref,
               w4_ref, b4_ref,
               o_ref):
    cd = w1_ref.dtype          # weight storage/compute dtype (bf16)
    nc = o_ref.shape[-1]       # true num_class (narrow output block)

    # Layer 1: cast streamed f32 rows to bf16 under the DMA, matmul in f32 acc.
    h = jnp.dot(x_ref[...].astype(cd), w1_ref[...],
                preferred_element_type=jnp.float32)
    h = jnp.maximum(h + b1_ref[...], 0.0)          # Dropout(eval)=identity

    # Layer 2
    h = jnp.dot(h.astype(cd), w2_ref[...], preferred_element_type=jnp.float32)
    h = jnp.maximum(h + b2_ref[...], 0.0)

    # Layer 3
    h = jnp.dot(h.astype(cd), w3_ref[...], preferred_element_type=jnp.float32)
    h = jnp.maximum(h + b3_ref[...], 0.0)

    # Layer 4: Linear + Sigmoid. Slice to the true class width before the
    # transcendentals so only `nc` columns hit the EUP and the store is narrow.
    logits = jnp.dot(h.astype(cd), w4_ref[...],
                     preferred_element_type=jnp.float32) + b4_ref[...]
    logits = logits[:, :nc]
    # NOTE: approx reciprocal has ~1e-3-level relative error; use approx=False
    # if downstream thresholds are tight near 0.5.
    o_ref[...] = pl.reciprocal(1.0 + jnp.exp(-logits), approx=True)


# --------------------------------------------------------------------------- #
# Helpers
# --------------------------------------------------------------------------- #
def _round_up(n, m):
    return ((n + m - 1) // m) * m


def _pad_to(a, shape):
    return jnp.pad(a, [(0, s - d) for d, s in zip(a.shape, shape)])


def _vmem_capacity_bytes():
    """Per-generation physical VMEM (64 MiB on v7x, 128 MiB on v5e/v6e)."""
    try:
        info = pltpu.get_tpu_info()
        cap = getattr(info, "vmem_capacity_bytes", None)
        if cap:
            return int(cap)
    except Exception:
        pass
    return 64 << 20   # conservative default (v7x per-TensorCore VMEM)


def prepare_params(params, weight_dtype=jnp.bfloat16):
    """One-time padding/cast of the weights (do NOT call per forward).

    Weights are stored (in_features, out_features); hidden widths are padded
    to multiples of 128 (lane-dense, zero padding is exact under ReLU) and
    cast to bf16; biases stay f32 (added to f32 accumulators).
    Returns (prepared_arrays, num_class).
    """
    w1, b1, w2, b2, w3, b3, w4, b4 = params
    D = w1.shape[0]
    H1p = _round_up(w1.shape[1], 128)
    H2p = _round_up(w2.shape[1], 128)
    H3p = _round_up(w3.shape[1], 128)
    Cp = _round_up(w4.shape[1], 128)

    arrays = (
        _pad_to(w1, (D, H1p)).astype(weight_dtype),
        _pad_to(b1, (1, H1p)).astype(jnp.float32),
        _pad_to(w2, (H1p, H2p)).astype(weight_dtype),
        _pad_to(b2, (1, H2p)).astype(jnp.float32),
        _pad_to(w3, (H2p, H3p)).astype(weight_dtype),
        _pad_to(b3, (1, H3p)).astype(jnp.float32),
        _pad_to(w4, (H3p, Cp)).astype(weight_dtype),
        _pad_to(b4, (1, Cp)).astype(jnp.float32),
    )
    return arrays, int(w4.shape[1])


# --------------------------------------------------------------------------- #
# Forward wrapper
# --------------------------------------------------------------------------- #
@functools.partial(jax.jit, static_argnames=("num_class", "tb"))
def mlp_forward(x, prepared, *, num_class=1, tb=None):
    """x: (B, word_dim) f32. prepared: output of prepare_params()[0]."""
    w1p, b1p, w2p, b2p, w3p, b3p, w4p, b4p = prepared
    B, D = x.shape
    H1p, H2p, H3p, Cp = (w1p.shape[1], w2p.shape[1], w3p.shape[1], w4p.shape[1])

    vmem_cap = _vmem_capacity_bytes()

    # Batch tile: 1024 rows on 128 MiB-VMEM parts (v5e/v6e), 512 on v7x, but
    # never bigger than ~half the batch so the grid has >=2 steps (keeps both
    # v7x TensorCores busy) and last-tile padding stays small.
    if tb is None:
        big_tile = 1024 if vmem_cap >= (96 << 20) else 512
        tb = min(big_tile, max(_round_up(pl.cdiv(B, 2), 8), 8))
    B_pad = _round_up(B, tb)

    xp = x.astype(jnp.float32)          # no-op for f32 inputs; no bf16 pre-pass
    if B_pad != B:
        xp = jnp.pad(xp, ((0, B_pad - B), (0, 0)))

    weight_args = (w1p, b1p, w2p, b2p, w3p, b3p, w4p, b4p)

    # Weights: whole-array, single VMEM-resident copy (no double buffering).
    resident_spec = pl.BlockSpec(memory_space=pltpu.MemorySpace.VMEM)
    in_specs = [pl.BlockSpec((tb, D), lambda i: (i, 0))] + [resident_spec] * 8
    # Narrow f32 output block: (tb, num_class) -> tiny writeback stream.
    out_specs = pl.BlockSpec((tb, num_class), lambda i: (i, 0))

    # VMEM budget: single-buffered weights + double-buffered f32 x/out tiles
    # + f32 intermediates, with headroom, capped below physical VMEM.
    weight_bytes = sum(int(a.size) * a.dtype.itemsize for a in weight_args)
    hmax = max(H1p, H2p, H3p, Cp)
    need = (weight_bytes
            + 2 * tb * D * 4                # x tile, double-buffered
            + 2 * tb * num_class * 4        # out tile, double-buffered
            + 3 * tb * hmax * 4)            # live intermediates (slack)
    vmem_limit = int(max(min(2 * need + (2 << 20), int(vmem_cap * 0.72)),
                         16 << 20))

    flops = 2 * B_pad * (D * H1p + H1p * H2p + H2p * H3p + H3p * Cp)
    bytes_accessed = B_pad * D * 4 + weight_bytes + B_pad * num_class * 4
    cost = pl.CostEstimate(flops=flops,
                           transcendentals=2 * B_pad * num_class,
                           bytes_accessed=bytes_accessed)

    out = pl.pallas_call(
        mlp_kernel,
        out_shape=jax.ShapeDtypeStruct((B_pad, num_class), jnp.float32),
        grid=(B_pad // tb,),
        in_specs=in_specs,
        out_specs=out_specs,
        compiler_params=pltpu.CompilerParams(
            dimension_semantics=("parallel",),
            vmem_limit_bytes=vmem_limit),
        cost_estimate=cost,
    )(xp, *weight_args)

    return out[:B]


# --------------------------------------------------------------------------- #
# Init + reference
# --------------------------------------------------------------------------- #
def init_params(key, word_dim, num_class=1):
    """Deterministic init mimicking PyTorch Linear default (U[-1/sqrt(fan_in), +])."""
    dims = [word_dim, word_dim // 2, word_dim // 4, word_dim // 8, num_class]
    params = []
    for i in range(4):
        fan_in, fan_out = dims[i], dims[i + 1]
        key, kw, kb = jax.random.split(key, 3)
        bound = 1.0 / jnp.sqrt(fan_in)
        w = jax.random.uniform(kw, (fan_in, fan_out), jnp.float32, -bound, bound)
        b = jax.random.uniform(kb, (1, fan_out), jnp.float32, -bound, bound)
        params += [w, b]
    return tuple(params)


def mlp_reference(x, params, compute_dtype=jnp.bfloat16):
    """Mirrors the kernel's bf16-storage / f32-accumulate numerics."""
    w1, b1, w2, b2, w3, b3, w4, b4 = params
    cd = compute_dtype
    h = jnp.dot(x.astype(cd), w1.astype(cd), preferred_element_type=jnp.float32)
    h = jnp.maximum(h + b1, 0.0)
    h = jnp.dot(h.astype(cd), w2.astype(cd), preferred_element_type=jnp.float32)
    h = jnp.maximum(h + b2, 0.0)
    h = jnp.dot(h.astype(cd), w3.astype(cd), preferred_element_type=jnp.float32)
    h = jnp.maximum(h + b3, 0.0)
    logits = jnp.dot(h.astype(cd), w4.astype(cd),
                     preferred_element_type=jnp.float32) + b4
    return jax.nn.sigmoid(logits)


# --------------------------------------------------------------------------- #
# Demo / self-test
# --------------------------------------------------------------------------- #
if __name__ == "__main__":
    key = jax.random.PRNGKey(0)
    B, word_dim, num_class = 8, 32, 1

    kx, kp = jax.random.split(key)
    x = jax.random.normal(kx, (B, word_dim), jnp.float32)
    params = init_params(kp, word_dim, num_class)

    prepared, nc = prepare_params(params)     # one-time pad + bf16 cast
    out = mlp_forward(x, prepared, num_class=nc)
    jax.block_until_ready(out)

    ref = mlp_reference(x, params)
    assert out.shape == (B, num_class), out.shape
    assert jnp.allclose(out, ref, atol=5e-3, rtol=5e-3), (
        f"max abs err {jnp.max(jnp.abs(out - ref))}")

    print("KERNEL_OK")
</pallas_src>

<mosaic_0001>
module attributes {stable_mosaic.version = 11 : i64} {
  func.func @mlp_kernel(%arg0: i32, %arg1: memref<8x32xf32, #tpu.memory_space<vmem>>, %arg2: memref<32x128xbf16, #tpu.memory_space<vmem>>, %arg3: memref<1x128xf32, #tpu.memory_space<vmem>>, %arg4: memref<128x128xbf16, #tpu.memory_space<vmem>>, %arg5: memref<1x128xf32, #tpu.memory_space<vmem>>, %arg6: memref<128x128xbf16, #tpu.memory_space<vmem>>, %arg7: memref<1x128xf32, #tpu.memory_space<vmem>>, %arg8: memref<128x128xbf16, #tpu.memory_space<vmem>>, %arg9: memref<1x128xf32, #tpu.memory_space<vmem>>, %arg10: memref<8x1xf32, #tpu.memory_space<vmem>>) attributes {dimension_semantics = [#tpu.dimension_semantics<parallel>], iteration_bounds = array<i64: 1>, scalar_prefetch = 0 : i64, scratch_operands = 0 : i64, tpu.core_type = #tpu.core_type<tc>, window_params = [{transform_indices = @transform_0, window_bounds = array<i64: 8, 32>}, {pipeline_mode = #tpu.pipeline_mode<synchronous>, transform_indices = @transform_1, window_bounds = array<i64: 32, 128>}, {pipeline_mode = #tpu.pipeline_mode<synchronous>, transform_indices = @transform_2, window_bounds = array<i64: 1, 128>}, {pipeline_mode = #tpu.pipeline_mode<synchronous>, transform_indices = @transform_3, window_bounds = array<i64: 128, 128>}, {pipeline_mode = #tpu.pipeline_mode<synchronous>, transform_indices = @transform_4, window_bounds = array<i64: 1, 128>}, {pipeline_mode = #tpu.pipeline_mode<synchronous>, transform_indices = @transform_5, window_bounds = array<i64: 128, 128>}, {pipeline_mode = #tpu.pipeline_mode<synchronous>, transform_indices = @transform_6, window_bounds = array<i64: 1, 128>}, {pipeline_mode = #tpu.pipeline_mode<synchronous>, transform_indices = @transform_7, window_bounds = array<i64: 128, 128>}, {pipeline_mode = #tpu.pipeline_mode<synchronous>, transform_indices = @transform_8, window_bounds = array<i64: 1, 128>}, {transform_indices = @transform_9, window_bounds = array<i64: 8, 1>}]} {
    %c0 = arith.constant 0 : index
    %c0_0 = arith.constant 0 : index
    %0 = vector.load %arg1[%c0, %c0_0] : memref<8x32xf32, #tpu.memory_space<vmem>>, vector<8x32xf32>
    %1 = arith.truncf %0 : vector<8x32xf32> to vector<8x32xbf16>
    %c0_1 = arith.constant 0 : index
    %c0_2 = arith.constant 0 : index
    %2 = vector.load %arg2[%c0_1, %c0_2] : memref<32x128xbf16, #tpu.memory_space<vmem>>, vector<32x128xbf16>
    %cst = arith.constant dense<0.000000e+00> : vector<8x128xf32>
    %3 = tpu.matmul %1, %2, %cst {dimension_numbers = #tpu.dot_dimension_numbers<[1], [0], [0], [1], [0, 0, 1, 1], [], []>} : vector<8x32xbf16>, vector<32x128xbf16>, vector<8x128xf32> -> vector<8x128xf32>
    %c0_3 = arith.constant 0 : index
    %c0_4 = arith.constant 0 : index
    %4 = vector.load %arg3[%c0_3, %c0_4] : memref<1x128xf32, #tpu.memory_space<vmem>>, vector<1x128xf32>
    %5 = vector.broadcast %4 : vector<1x128xf32> to vector<8x128xf32>
    %6 = arith.addf %3, %5 : vector<8x128xf32>
    %cst_5 = arith.constant 0.000000e+00 : f32
    %7 = vector.broadcast %cst_5 : f32 to vector<8x128xf32>
    %8 = arith.maximumf %6, %7 : vector<8x128xf32>
    %9 = arith.truncf %8 : vector<8x128xf32> to vector<8x128xbf16>
    %c0_6 = arith.constant 0 : index
    %c0_7 = arith.constant 0 : index
    %10 = vector.load %arg4[%c0_6, %c0_7] : memref<128x128xbf16, #tpu.memory_space<vmem>>, vector<128x128xbf16>
    %cst_8 = arith.constant dense<0.000000e+00> : vector<8x128xf32>
    %11 = tpu.matmul %9, %10, %cst_8 {dimension_numbers = #tpu.dot_dimension_numbers<[1], [0], [0], [1], [0, 0, 1, 1], [], []>} : vector<8x128xbf16>, vector<128x128xbf16>, vector<8x128xf32> -> vector<8x128xf32>
    %c0_9 = arith.constant 0 : index
    %c0_10 = arith.constant 0 : index
    %12 = vector.load %arg5[%c0_9, %c0_10] : memref<1x128xf32, #tpu.memory_space<vmem>>, vector<1x128xf32>
    %13 = vector.broadcast %12 : vector<1x128xf32> to vector<8x128xf32>
    %14 = arith.addf %11, %13 : vector<8x128xf32>
    %cst_11 = arith.constant 0.000000e+00 : f32
    %15 = vector.broadcast %cst_11 : f32 to vector<8x128xf32>
    %16 = arith.maximumf %14, %15 : vector<8x128xf32>
    %17 = arith.truncf %16 : vector<8x128xf32> to vector<8x128xbf16>
    %c0_12 = arith.constant 0 : index
    %c0_13 = arith.constant 0 : index
    %18 = vector.load %arg6[%c0_12, %c0_13] : memref<128x128xbf16, #tpu.memory_space<vmem>>, vector<128x128xbf16>
    %cst_14 = arith.constant dense<0.000000e+00> : vector<8x128xf32>
    %19 = tpu.matmul %17, %18, %cst_14 {dimension_numbers = #tpu.dot_dimension_numbers<[1], [0], [0], [1], [0, 0, 1, 1], [], []>} : vector<8x128xbf16>, vector<128x128xbf16>, vector<8x128xf32> -> vector<8x128xf32>
    %c0_15 = arith.constant 0 : index
    %c0_16 = arith.constant 0 : index
    %20 = vector.load %arg7[%c0_15, %c0_16] : memref<1x128xf32, #tpu.memory_space<vmem>>, vector<1x128xf32>
    %21 = vector.broadcast %20 : vector<1x128xf32> to vector<8x128xf32>
    %22 = arith.addf %19, %21 : vector<8x128xf32>
    %cst_17 = arith.constant 0.000000e+00 : f32
    %23 = vector.broadcast %cst_17 : f32 to vector<8x128xf32>
    %24 = arith.maximumf %22, %23 : vector<8x128xf32>
    %25 = arith.truncf %24 : vector<8x128xf32> to vector<8x128xbf16>
    %c0_18 = arith.constant 0 : index
    %c0_19 = arith.constant 0 : index
    %26 = vector.load %arg8[%c0_18, %c0_19] : memref<128x128xbf16, #tpu.memory_space<vmem>>, vector<128x128xbf16>
    %cst_20 = arith.constant dense<0.000000e+00> : vector<8x128xf32>
    %27 = tpu.matmul %25, %26, %cst_20 {dimension_numbers = #tpu.dot_dimension_numbers<[1], [0], [0], [1], [0, 0, 1, 1], [], []>} : vector<8x128xbf16>, vector<128x128xbf16>, vector<8x128xf32> -> vector<8x128xf32>
    %c0_21 = arith.constant 0 : index
    %c0_22 = arith.constant 0 : index
    %28 = vector.load %arg9[%c0_21, %c0_22] : memref<1x128xf32, #tpu.memory_space<vmem>>, vector<1x128xf32>
    %29 = vector.broadcast %28 : vector<1x128xf32> to vector<8x128xf32>
    %30 = arith.addf %27, %29 : vector<8x128xf32>
    %31 = vector.extract_strided_slice %30 {offsets = [0, 0], sizes = [8, 1], strides = [1, 1]} : vector<8x128xf32> to vector<8x1xf32>
    %cst_23 = arith.constant 0.000000e+00 : f32
    %32 = vector.broadcast %cst_23 : f32 to vector<8x1xf32>
    %33 = arith.subf %32, %31 : vector<8x1xf32>
    %34 = math.exp %33 : vector<8x1xf32>
    %cst_24 = arith.constant 1.000000e+00 : f32
    %35 = vector.broadcast %cst_24 : f32 to vector<8x1xf32>
    %36 = arith.addf %35, %34 : vector<8x1xf32>
    %37 = tpu.reciprocal %36 {approx = true} : vector<8x1xf32> -> vector<8x1xf32>
    %c0_25 = arith.constant 0 : index
    %c0_26 = arith.constant 0 : index
    %38 = vector.load %arg10[%c0_25, %c0_26] : memref<8x1xf32, #tpu.memory_space<vmem>>, vector<8x1xf32>
    tpu.vector_store %arg10[%c0_25, %c0_26], %37 {strides = array<i32>} : memref<8x1xf32, #tpu.memory_space<vmem>>, vector<8x1xf32>,
    return
  }
  func.func @transform_0(%arg0: i32) -> (i32, i32) {
    %c0_i32 = arith.constant 0 : i32
    %c0_i32_0 = arith.constant 0 : i32
    return %arg0, %c0_i32 : i32, i32
  }
  func.func @transform_1(%arg0: i32) -> (i32, i32) {
    %c0_i32 = arith.constant 0 : i32
    %c0_i32_0 = arith.constant 0 : i32
    %c0_i32_1 = arith.constant 0 : i32
    return %c0_i32, %c0_i32_0 : i32, i32
  }
  func.func @transform_2(%arg0: i32) -> (i32, i32) {
    %c0_i32 = arith.constant 0 : i32
    %c0_i32_0 = arith.constant 0 : i32
    %c0_i32_1 = arith.constant 0 : i32
    return %c0_i32, %c0_i32_0 : i32, i32
  }
  func.func @transform_3(%arg0: i32) -> (i32, i32) {
    %c0_i32 = arith.constant 0 : i32
    %c0_i32_0 = arith.constant 0 : i32
    %c0_i32_1 = arith.constant 0 : i32
    return %c0_i32, %c0_i32_0 : i32, i32
  }
  func.func @transform_4(%arg0: i32) -> (i32, i32) {
    %c0_i32 = arith.constant 0 : i32
    %c0_i32_0 = arith.constant 0 : i32
    %c0_i32_1 = arith.constant 0 : i32
    return %c0_i32, %c0_i32_0 : i32, i32
  }
  func.func @transform_5(%arg0: i32) -> (i32, i32) {
    %c0_i32 = arith.constant 0 : i32
    %c0_i32_0 = arith.constant 0 : i32
    %c0_i32_1 = arith.constant 0 : i32
    return %c0_i32, %c0_i32_0 : i32, i32
  }
  func.func @transform_6(%arg0: i32) -> (i32, i32) {
    %c0_i32 = arith.constant 0 : i32
    %c0_i32_0 = arith.constant 0 : i32
    %c0_i32_1 = arith.constant 0 : i32
    return %c0_i32, %c0_i32_0 : i32, i32
  }
  func.func @transform_7(%arg0: i32) -> (i32, i32) {
    %c0_i32 = arith.constant 0 : i32
    %c0_i32_0 = arith.constant 0 : i32
    %c0_i32_1 = arith.constant 0 : i32
    return %c0_i32, %c0_i32_0 : i32, i32
  }
  func.func @transform_8(%arg0: i32) -> (i32, i32) {
    %c0_i32 = arith.constant 0 : i32
    %c0_i32_0 = arith.constant 0 : i32
    %c0_i32_1 = arith.constant 0 : i32
    return %c0_i32, %c0_i32_0 : i32, i32
  }
  func.func @transform_9(%arg0: i32) -> (i32, i32) {
    %c0_i32 = arith.constant 0 : i32
    %c0_i32_0 = arith.constant 0 : i32
    return %arg0, %c0_i32 : i32, i32
  }
}

</mosaic_0001>

<bundles_post_ra>
// kernel: mlp_forward.1
= control target key start
LH: loop header
LB: loop body
LE: loop exit
PB: predicated region body
PF: predicated region fallthrough
CT: control target
= control target key end

     0   :  { %14 = vsyncpa [#allocation3], 0  ;;  %s930_s0 = inlined_call_operand.hbm [shape: f32[8,32], index: 0, kind: input, shape index: {}]   ;;  %s931_s1 = inlined_call_operand.hbm [shape: bf16[32,128], index: 1, kind: input, shape index: {}]   ;;  %s932_s2 = inlined_call_operand.vmem [shape: f32[1,128], index: 2, kind: input, shape index: {}]   ;;  %s933_s3 = inlined_call_operand.hbm [shape: bf16[128,128], index: 3, kind: input, shape index: {}]   ;;  %s934_s4 = inlined_call_operand.vmem [shape: f32[1,128], index: 4, kind: input, shape index: {}]   ;;  %s935_s5 = inlined_call_operand.hbm [shape: bf16[128,128], index: 5, kind: input, shape index: {}]   ;;  %s936_s6 = inlined_call_operand.vmem [shape: f32[1,128], index: 6, kind: input, shape index: {}]   ;;  %s937_s7 = inlined_call_operand.hbm [shape: bf16[128,128], index: 7, kind: input, shape index: {}]   ;;  %s938_s8 = inlined_call_operand.vmem [shape: f32[1,128], index: 8, kind: input, shape index: {}]   ;;  %s939_s9 = inlined_call_operand.vmem [shape: f32[8,1], index: 9, kind: output, shape index: {}]  }
   0x1   :  { %15 = vsyncpa [#allocation5], 0 }
   0x2   :  { %16 = vsyncpa [#allocation8], 0  ;;  %s795_s30 = smov [#allocation4]  }
   0x3   :  { %s32_s10 = sshll.u32 %s795_s30, 4  ;;  %s33_s10 = int_to_ptr.vmem [resolvable:$true] %s32_s10 }
   0x4   :  { %s697_s11 = scalar_lea.vmem %s33_s10, 256  ;;  %p702_p1 = scmp.lt.s32.totalorder %s33_s10, %s33_s10 }
   0x5   :  { %p698_p0 = scmp.ne.s32.totalorder %s33_s10, %s697_s11  ;;  %p703_p2 = scmp.lt.s32.totalorder %s697_s11, %s697_s11 }
   0x7   :  { %p704_p3 = por %p703_p2, %p702_p1 }
   0x9   :  { %p705_p4 = pnand %p704_p3, %p698_p0 }
   0xb   :  { %708 = shalt.err (!%p705_p4)
}
   0xc   :  { %s796_s12 = smov 64   ;;  %s797_s13 = smov 4  }
   0xd   :  { %38 = dma.hbm_to_vmem [thread:$0]  %s931_s1, 256, %s33_s10, [#allocation5], %s796_s12, %s796_s12, %s797_s13  }
   0xe   :  { %s798_s16 = smov [#allocation7]   ;;  %s799_s18 = smov [#allocation2]  }
   0xf   :  { %s60_s17 = sshll.u32 %s798_s16, 4  ;;  %s23_s19 = sshll.u32 %s799_s18, 4  ;;  %s61_s17 = int_to_ptr.vmem [resolvable:$true] %s60_s17  ;;  %s24_s19 = int_to_ptr.vmem [resolvable:$true] %s23_s19 }
  0x10   :  { %s717_s20 = scalar_lea.vmem %s61_s17, 1024  ;;  %p722_p6 = scmp.lt.s32.totalorder %s61_s17, %s61_s17 }
  0x11   :  { %p718_p5 = scmp.ne.s32.totalorder %s61_s17, %s717_s20  ;;  %p723_p7 = scmp.lt.s32.totalorder %s717_s20, %s717_s20 }
  0x13   :  { %p724_p8 = por %p723_p7, %p722_p6 }
  0x15   :  { %p725_p9 = pnand %p724_p8, %p718_p5 }
  0x17   :  { %728 = shalt.err (!%p725_p9)
}
  0x18   :  { %66 = dma.hbm_to_vmem [thread:$0]  %s935_s5, 1024, %s61_s17, [#allocation8], %s796_s12, %s796_s12, %s797_s13  }
  0x19   :  { %s737_s1 = scalar_lea.vmem %s24_s19, 128  ;;  %p742_p11 = scmp.lt.s32.totalorder %s24_s19, %s24_s19 }
  0x1a   :  { %p738_p10 = scmp.ne.s32.totalorder %s24_s19, %s737_s1  ;;  %p743_p12 = scmp.lt.s32.totalorder %s737_s1, %s737_s1 }
  0x1c   :  { %p744_p13 = por %p743_p12, %p742_p11 }
  0x1e   :  { %p745_p0 = pnand %p744_p13, %p738_p10 }
  0x20   :  { %748 = shalt.err (!%p745_p0)
}
  0x21   :  { %26 = dma.hbm_to_vmem [thread:$0]  %s930_s0, 128, %s24_s19, [#allocation3]  }
  0x22   :  { %s800_s25 = smov [#allocation6]   ;;  %s801_s27 = smov [#allocation9]  }
  0x23   :  { %s46_s26 = sshll.u32 %s800_s25, 4  ;;  %s74_s28 = sshll.u32 %s801_s27, 4  ;;  %s47_s26 = int_to_ptr.vmem [resolvable:$true] %s46_s26  ;;  %s75_s28 = int_to_ptr.vmem [resolvable:$true] %s74_s28 }
  0x24   :  { %s757_s29 = scalar_lea.vmem %s47_s26, 1024  ;;  %p762_p2 = scmp.lt.s32.totalorder %s47_s26, %s47_s26 }
  0x25   :  { %p758_p1 = scmp.ne.s32.totalorder %s47_s26, %s757_s29  ;;  %p763_p3 = scmp.lt.s32.totalorder %s757_s29, %s757_s29 }
  0x27   :  { %p764_p4 = por %p763_p3, %p762_p2 }
  0x29   :  { %p765_p5 = pnand %p764_p4, %p758_p1 }
  0x2b   :  { %768 = shalt.err (!%p765_p5)
}
  0x2c   :  { %52 = dma.hbm_to_vmem [thread:$0]  %s933_s3, 1024, %s47_s26, [#allocation5], %s796_s12, %s796_s12, %s797_s13  }
  0x2d   :  { %s777_s0 = scalar_lea.vmem %s75_s28, 1024  ;;  %p782_p7 = scmp.lt.s32.totalorder %s75_s28, %s75_s28 }
  0x2e   :  { %p778_p6 = scmp.ne.s32.totalorder %s75_s28, %s777_s0  ;;  %p783_p8 = scmp.lt.s32.totalorder %s777_s0, %s777_s0 }
  0x30   :  { %p784_p9 = por %p783_p8, %p782_p7 }
  0x32   :  { %p785_p10 = pnand %p784_p9, %p778_p6 }
  0x34   :  { %788 = shalt.err (!%p785_p10)
}
  0x35   :  { %80 = dma.hbm_to_vmem [thread:$0]  %s937_s7, 1024, %s75_s28, [#allocation8], %s796_s12, %s796_s12, %s797_s13  }
  0x36   :  { %789 = dma.done.wait [#allocation3], 128  }
  0x37   :  { %790 = vsyncadd [#allocation3], 4294967168 }
  0x38   :  { %791 = dma.done.wait [#allocation5], 1280  }
  0x39   :  { %792 = vsyncadd [#allocation5], 4294966016 }
  0x3a   :  { %793 = dma.done.wait [#allocation8], 2048  }
  0x3b   :  { %794 = vsyncadd [#allocation8], 4294965248  ;;  %v802_v0 = vmov 0.0   ;;  %vm803_vm0 = vmmov 0   ;;  %v659_v1 = vld [vmem:[#allocation4 + $0x8] sm:$0xff]   ;;  %v660_v2 = vld [vmem:[#allocation4] sm:$0xff]  }
  0x3c   :  { %582 = vmatprep.subr.bf16.mxu0 %v802_v0  ;;  %586 = vmatprep.mubr.msk.bf16.mxu0 %vm803_vm0, %v802_v0  ;;  %v99_v3 = vld [vmem:[#allocation2] sm:$0xff]  ;;  %v661_v4 = vld [vmem:[#allocation6 + $0x38] sm:$0xff]   ;;  %v662_v6 = vld [vmem:[#allocation6 + $0x30] sm:$0xff]   ;;  %vm124_vm1 = vcmask 261120   ;;  %vm512_vm2 = vcmask 7168  }
  0x3d   :  { %590 = vmatprep.subr.bf16.mxu1 %v802_v0  ;;  %606 = vmatprep.mubr.msk.bf16.mxu1 %vm803_vm0, %v802_v0  ;;  %v100_v5 = vpack.c.bf16 %v99_v3, %v99_v3  ;;  %v663_v7 = vld [vmem:[#allocation6 + $0x28] sm:$0xff]   ;;  %v664_v8 = vld [vmem:[#allocation6 + $0x20] sm:$0xff]   ;;  %v665_v9 = vld [vmem:[#allocation6 + $0x18] sm:$0xff]  }
  0x3e   :  { %583 = vmatpush3.bf16.msra.mxu0 %v659_v1  ;;  %591 = vmatpush3.bf16.msra.mxu1 %v661_v4  ;;  %v666_v10 = vld [vmem:[#allocation6 + $0x10] sm:$0xff]   ;;  %v667_v11 = vld [vmem:[#allocation6 + $0x8] sm:$0xff]   ;;  %v668_v12 = vld [vmem:[#allocation6] sm:$0xff]  }
  0x3f   :  { %584 = vmatprep.subr.bf16.mxu0 %v802_v0  ;;  %592 = vmatprep.subr.bf16.mxu1 %v802_v0  ;;  %v669_v13 = vld [vmem:[#allocation7 + $0x38] sm:$0xff]   ;;  %v670_v14 = vld [vmem:[#allocation7 + $0x30] sm:$0xff]   ;;  %v671_v15 = vld [vmem:[#allocation7 + $0x28] sm:$0xff]  }
  0x40   :  { %v672_v16 = vld [vmem:[#allocation7 + $0x20] sm:$0xff]   ;;  %v673_v17 = vld [vmem:[#allocation7 + $0x18] sm:$0xff]   ;;  %v674_v18 = vld [vmem:[#allocation7 + $0x10] sm:$0xff]  }
  0x41   :  { %v521_v19 = vld [vmem:[%s932_s2] ss:$0 sm:$0xff]  ;;  %v676_v28 = vld [vmem:[#allocation7] sm:$0xff]   ;;  %v677_v29 = vld [vmem:[#allocation9 + $0x38] sm:$0xff]  }
  0x42   :  { %585 = vmatpush3.bf16.msra.mxu0 %v660_v2  ;;  %593 = vmatpush3.bf16.msra.mxu1 %v662_v6  ;;  %v675_v27 = vld [vmem:[#allocation7 + $0x8] sm:$0xff]   ;;  %v678_v30 = vld [vmem:[#allocation9 + $0x30] sm:$0xff]   ;;  %v680_v32 = vld [vmem:[#allocation9 + $0x20] sm:$0xff]  }
  0x43   :  { %610 = vmatprep.subr.bf16.mxu0 %v802_v0  ;;  %594 = vmatprep.subr.bf16.mxu1 %v802_v0  ;;  %v679_v31 = vld [vmem:[#allocation9 + $0x28] sm:$0xff]   ;;  %v681_v33 = vld [vmem:[#allocation9 + $0x18] sm:$0xff]   ;;  %v682_v34 = vld [vmem:[#allocation9 + $0x10] sm:$0xff]  }
  0x44   :  { %v525_v35 = vld [vmem:[%s934_s4] ss:$0 sm:$0xff]  ;;  %v684_v44 = vld [vmem:[#allocation9] sm:$0xff]  }
  0x45   :  { %587 = vmatmul.mubr.msk.bf16.vlgmr.msra.gmra.mxu0 %vm124_vm1, %v100_v5  ;;  %v683_v43 = vld [vmem:[#allocation9 + $0x8] sm:$0xff]  }
  0x46   :  { %626 = vmatprep.mubr.msk.bf16.mxu0 %vm803_vm0, %v802_v0  ;;  %595 = vmatpush3.bf16.msra.mxu1 %v663_v7  ;;  %v534_v45 = vld [vmem:[%s936_s6] ss:$0 sm:$0xff] }
  0x47   :  { %596 = vmatprep.subr.bf16.mxu1 %v802_v0  ;;  %611 = vmatpush3.bf16.msra.mxu0 %v669_v13  ;;  %v543_v53 = vld [vmem:[%s938_s8] ss:$0 sm:$0xff] }
  0x48   :  { %612 = vmatprep.subr.bf16.mxu0 %v802_v0 }
  0x4a   :  { %597 = vmatpush3.bf16.msra.mxu1 %v664_v8 }
  0x4b   :  { %598 = vmatprep.subr.bf16.mxu1 %v802_v0  ;;  %613 = vmatpush3.bf16.msra.mxu0 %v670_v14 }
  0x4c   :  { %614 = vmatprep.subr.bf16.mxu0 %v802_v0 }
  0x4e   :  { %599 = vmatpush3.bf16.msra.mxu1 %v665_v9 }
  0x4f   :  { %600 = vmatprep.subr.bf16.mxu1 %v802_v0  ;;  %615 = vmatpush3.bf16.msra.mxu0 %v671_v15 }
  0x50   :  { %616 = vmatprep.subr.bf16.mxu0 %v802_v0 }
  0x52   :  { %601 = vmatpush3.bf16.msra.mxu1 %v666_v10 }
  0x53   :  { %602 = vmatprep.subr.bf16.mxu1 %v802_v0  ;;  %617 = vmatpush3.bf16.msra.mxu0 %v672_v16 }
  0x54   :  { %618 = vmatprep.subr.bf16.mxu0 %v802_v0 }
  0x56   :  { %603 = vmatpush3.bf16.msra.mxu1 %v667_v11 }
  0x57   :  { %604 = vmatprep.subr.bf16.mxu1 %v802_v0  ;;  %619 = vmatpush3.bf16.msra.mxu0 %v673_v17 }
  0x58   :  { %620 = vmatprep.subr.bf16.mxu0 %v802_v0 }
  0x5a   :  { %605 = vmatpush3.bf16.msra.mxu1 %v668_v12 }
  0x5b   :  { %630 = vmatprep.subr.bf16.mxu1 %v802_v0  ;;  %621 = vmatpush3.bf16.msra.mxu0 %v674_v18 }
  0x5c   :  { %622 = vmatprep.subr.bf16.mxu0 %v802_v0 }
  0x5f   :  { %623 = vmatpush3.bf16.msra.mxu0 %v675_v27 }
  0x60   :  { %624 = vmatprep.subr.bf16.mxu0 %v802_v0 }
  0x63   :  { %625 = vmatpush3.bf16.msra.mxu0 %v676_v28 }
 0x105   :  { %v162_v20 = vpop.f32.mrf.mxu0 }
 0x106   :  { %v163_v21 = vadd.f32 %v521_v19, %v162_v20 }
 0x107   :  { %v588_v22 = vpop.f32.mrf.mxu0 }
 0x108   :  { %v168_v23 = vmax.f32 %v163_v21, 0.0 }
 0x109   :  { %v165_v24 = vpop.f32.mrf.mxu0 }
 0x10a   :  { %v169_v25 = vpack.c.bf16 %v168_v23, %v168_v23 }
 0x10b   :  { %v589_v26 = vpop.f32.mrf.mxu0 }
 0x10c   :  { %607 = vmatmul.mubr.bf16.vlgmr.msra.gmra.mxu1 %v169_v25 }
 0x10d   :  { %646 = vmatprep.mubr.msk.bf16.mxu1 %vm803_vm0, %v802_v0  ;;  %631 = vmatpush3.bf16.msra.mxu1 %v677_v29 }
 0x10e   :  { %632 = vmatprep.subr.bf16.mxu1 %v802_v0 }
 0x111   :  { %633 = vmatpush3.bf16.msra.mxu1 %v678_v30 }
 0x112   :  { %634 = vmatprep.subr.bf16.mxu1 %v802_v0 }
 0x115   :  { %635 = vmatpush3.bf16.msra.mxu1 %v679_v31 }
 0x116   :  { %636 = vmatprep.subr.bf16.mxu1 %v802_v0 }
 0x119   :  { %637 = vmatpush3.bf16.msra.mxu1 %v680_v32 }
 0x11a   :  { %638 = vmatprep.subr.bf16.mxu1 %v802_v0 }
 0x11d   :  { %639 = vmatpush3.bf16.msra.mxu1 %v681_v33 }
 0x11e   :  { %640 = vmatprep.subr.bf16.mxu1 %v802_v0 }
 0x121   :  { %641 = vmatpush3.bf16.msra.mxu1 %v682_v34 }
 0x122   :  { %642 = vmatprep.subr.bf16.mxu1 %v802_v0 }
 0x125   :  { %643 = vmatpush3.bf16.msra.mxu1 %v683_v43 }
 0x126   :  { %644 = vmatprep.subr.bf16.mxu1 %v802_v0 }
 0x129   :  { %645 = vmatpush3.bf16.msra.mxu1 %v684_v44 }
 0x1cc   :  { %v275_v36 = vpop.f32.mrf.mxu1 }
 0x1cd   :  { %v276_v37 = vadd.f32 %v525_v35, %v275_v36 }
 0x1ce   :  { %v608_v38 = vpop.f32.mrf.mxu1 }
 0x1cf   :  { %v281_v39 = vmax.f32 %v276_v37, 0.0 }
 0x1d0   :  { %v278_v40 = vpop.f32.mrf.mxu1 }
 0x1d1   :  { %v282_v41 = vpack.c.bf16 %v281_v39, %v281_v39 }
 0x1d2   :  { %v609_v42 = vpop.f32.mrf.mxu1 }
 0x1d3   :  { %627 = vmatmul.mubr.bf16.vlgmr.msra.gmra.mxu0 %v282_v41 }
 0x293   :  { %v388_v46 = vpop.f32.mrf.mxu0 }
 0x294   :  { %v389_v47 = vadd.f32 %v534_v45, %v388_v46 }
 0x295   :  { %v628_v48 = vpop.f32.mrf.mxu0 }
 0x296   :  { %v394_v49 = vmax.f32 %v389_v47, 0.0 }
 0x297   :  { %v391_v50 = vpop.f32.mrf.mxu0 }
 0x298   :  { %v395_v51 = vpack.c.bf16 %v394_v49, %v394_v49 }
 0x299   :  { %v629_v52 = vpop.f32.mrf.mxu0 }
 0x29a   :  { %647 = vmatmul.mubr.bf16.vlgmr.msra.gmra.mxu1 %v395_v51 }
 0x35a   :  { %v501_v54 = vpop.f32.mrf.mxu1 }
 0x35b   :  { %v502_v55 = vadd.f32 %v543_v53, %v501_v54 }
 0x35c   :  { %v648_v56 = vpop.f32.mrf.mxu1 }
 0x35d   :  { %v507_v57 = vsub.f32 0.0, %v502_v55 }
 0x35e   :  { %v504_v58 = vpop.f32.mrf.mxu1 }
 0x35f   :  { %v508_v59 = vmul.f32 1.442695, %v507_v57 }
 0x360   :  { %v649_v60 = vpop.f32.mrf.mxu1 }
 0x361   :  { %685 = vpow2.f32 %v508_v59 }
 0x36e   :  { %v686_v61 = vpop.eup %685 }
 0x36f   :  { %v510_v62 = vadd.f32 1.0, %v686_v61 }
 0x371   :  { %687 = vrcp.f32 %v510_v62 }
 0x37e   :  { %v688_v63 = vpop.eup %687 }
 0x37f   :  { %513 = vst.msk [vmem:[%s939_s9] sm:$0xff] %vm512_vm2, %v688_v63 }
 0x380   :  { %518 = vsyncpa [#allocation3], 1 }
 0x381   :  { %519 = vsyncpa [#allocation5], 1 }
 0x382   :  { %520 = vsyncpa [#allocation8], 1 }

</bundles_post_ra>
